<compile_context>
chip_gen: v7x
topology: tpu7x:2x2x1
jax: 0.10.0
libtpu: 0.0.40
codegen_flags: <defaults>
</compile_context>

<pallas_src>
import jax
import jax.numpy as jnp
from jax import lax
from jax.experimental import pallas as pl
from jax.experimental.pallas import tpu as pltpu


# ----------------------------------------------------------------------------
# Hardware / tiling helpers
# ----------------------------------------------------------------------------
def _vmem_capacity_bytes():
    try:
        info = pltpu.get_tpu_info()
        cap = getattr(info, "vmem_capacity_bytes", None)
        if cap:
            return int(cap)
    except Exception:
        pass
    return 64 << 20  # conservative default: v7x per-TensorCore VMEM


def _padded_bytes(shape, itemsize):
    """VMEM footprint of an array, rounded up to (sublane, lane) tiles."""
    dims = list(shape)
    if not dims:
        return 4
    dims[-1] = -(-dims[-1] // 128) * 128
    if len(dims) >= 2:
        sub = 16 if itemsize < 4 else 8
        dims[-2] = -(-dims[-2] // sub) * sub
    n = 1
    for d in dims:
        n *= d
    return n * itemsize


def _pick_row_tile(ho, est_bytes, limit, max_rows):
    """Largest divisor of `ho` (<= max_rows) whose VMEM estimate fits `limit`."""
    best = 1
    for th in range(1, min(ho, max_rows) + 1):
        if ho % th == 0 and est_bytes(th) <= limit:
            best = th
    # TODO(synk): Ho with no mid-size divisor (e.g. prime) degrades to th=1; a
    # cdiv grid with a masked last tile would avoid the per-step overhead.
    return best


def _force_two_steps(th, ho, n):
    """v7x has 2 TensorCores: make sure the parallel grid has >= 2 steps."""
    if n == 1 and ho // th < 2 and ho > 1:
        for cand in range(ho // 2, 0, -1):
            if ho % cand == 0:
                return cand
    return th


# ----------------------------------------------------------------------------
# Conv (kernel=3, stride=2, pad right/bottom by 1)
# ----------------------------------------------------------------------------
def prepare_conv_params(weight, bias, compute_dtype=jnp.bfloat16):
    """Pre-stack the conv weights for the merged-tap MXU dots.

    Hoist this to model init so it is not re-emitted every forward pass.
    weight: (Cout, Cin, 3, 3) [PyTorch OIHW], bias: (Cout,).
    Returns (w01, w2, b):
      w01[kh] = concat([w[kh,0], w[kh,1]]) : (3, 2*Cin, Cout)
      w2[kh]  = w[kh,2]                    : (3,   Cin, Cout)
      b                                    : (1, Cout) f32
    """
    w = jnp.transpose(weight, (2, 3, 1, 0)).astype(compute_dtype)  # (kh,kw,ci,co)
    w01 = jnp.concatenate([w[:, 0], w[:, 1]], axis=1)
    w2 = w[:, 2]
    b = bias.reshape(1, -1).astype(jnp.float32)
    return w01, w2, b


def _conv_kernel(xm_ref, xb_ref, w01_ref, w2_ref, b_ref, o_ref):
    # xm_ref : (1, 2*th, Wo, 2*Cin)  column-paired rows of this output-row tile
    #          [0, 2q+s, p, :] = x[2*(r0+q)+s, 2p:2p+2, :] flattened on lanes
    # xb_ref : (1, 2, Wo, 2*Cin)     first row pair of the next tile (boundary)
    # w01_ref: (3, 2*Cin, Cout)      stacked kw=0/kw=1 weights per kh
    # w2_ref : (3, Cin, Cout)        kw=2 weights per kh
    # b_ref  : (1, Cout)             bias (f32)
    # o_ref  : (1, th, Wo, Cout)
    th, wo, cout = o_ref.shape[1], o_ref.shape[2], o_ref.shape[3]
    c2 = xm_ref.shape[3]
    cin = c2 // 2
    m = th * wo
    cdtype = w01_ref.dtype

    xm = xm_ref[0].astype(cdtype).reshape(th, 2, wo, c2)
    even = xm[:, 0]                       # input rows 2r      (kh = 0)
    odd = xm[:, 1]                        # input rows 2r+1    (kh = 1)

    # Boundary even row (input row 2*(r0+th)).  On the last row tile this is
    # PyTorch's bottom zero-pad row, so it is forced to zero.
    last_tile = pl.program_id(1) == pl.num_programs(1) - 1
    bscale = jnp.where(last_tile, 0.0, 1.0).astype(cdtype)
    bnd = xb_ref[0, 0:1].astype(cdtype) * bscale          # (1, Wo, 2*Cin)

    # kh = 2 rows: even rows shifted by one output row (input rows 2r+2).
    even2 = jnp.concatenate([even[1:], bnd], axis=0) if th > 1 else bnd

    # kw = 2 tap mask: output column Wo-1 reads the right zero-pad column.
    keep = (lax.broadcasted_iota(jnp.int32, (m, 1), 0) % wo) != (wo - 1)

    def contrib(rows, kh):
        flat = rows.reshape(m, c2)
        # merged kw=0 / kw=1 tap: lane-contiguous, K = 2*Cin (fills the MXU)
        p = jnp.dot(flat, w01_ref[kh], preferred_element_type=jnp.float32)
        # kw=2 tap: column pair s+1 low half; last output column reads the
        # right zero-pad column -> masked to zero (XLU roll + VPU select).
        nxt = pltpu.roll(flat, shift=m - 1, axis=0)[:, 0:cin]
        tap2 = jnp.where(keep, nxt, jnp.zeros_like(nxt))
        return p + jnp.dot(tap2, w2_ref[kh], preferred_element_type=jnp.float32)

    acc = contrib(even, 0)                # first dot initializes the accumulator
    acc = acc + contrib(odd, 1)
    acc = acc + contrib(even2, 2)
    acc = acc + b_ref[...].astype(jnp.float32)
    o_ref[0] = acc.reshape(th, wo, cout).astype(o_ref.dtype)


def _conv_downsample_pallas(x, params, *, max_row_tile=256):
    # x: (N, H, W, Cin) with H, W even; params from prepare_conv_params.
    w01, w2, b = params
    n, h, w, cin = x.shape
    cout = w01.shape[-1]
    ho, wo = h // 2, w // 2
    c2 = 2 * cin

    xq = x.reshape(n, h, wo, c2)          # free column-pair relayout (no HBM pass)

    in_sz = x.dtype.itemsize
    cd_sz = w01.dtype.itemsize
    out_sz = x.dtype.itemsize

    def est(th):
        blk_in = _padded_bytes((2 * th, wo, c2), in_sz)
        blk_bnd = _padded_bytes((2, wo, c2), in_sz)
        blk_w = (_padded_bytes((3, c2, cout), cd_sz)
                 + _padded_bytes((3, cin, cout), cd_sz))
        blk_b = _padded_bytes((1, cout), 4)
        blk_out = _padded_bytes((th, wo, cout), out_sz)
        pipelined = 2 * (blk_in + blk_bnd + blk_w + blk_b + blk_out)
        temps = (_padded_bytes((2 * th, wo, c2), cd_sz)      # compute-dtype cast
                 + _padded_bytes((th, wo, c2), cd_sz)        # kh=2 rows (concat)
                 + _padded_bytes((th * wo, cin), cd_sz)      # kw=2 tap
                 + 2 * _padded_bytes((th * wo, cout), 4))    # acc + live dot out
        return pipelined + temps

    cap = _vmem_capacity_bytes()
    th = _pick_row_tile(ho, est, int(0.6 * cap), max_row_tile)
    th = _force_two_steps(th, ho, n)
    num_tiles = ho // th
    vmem_limit = int(min(0.75 * cap, max(est(th) + (4 << 20), 32 << 20)))

    return pl.pallas_call(
        _conv_kernel,
        out_shape=jax.ShapeDtypeStruct((n, ho, wo, cout), x.dtype),
        grid=(n, num_tiles),
        in_specs=[
            # main row-pair block of this output-row tile
            pl.BlockSpec((1, 2 * th, wo, c2), lambda i, j: (i, j, 0, 0)),
            # first row pair of the next tile (clamped; zeroed in-kernel on the
            # last tile, where it corresponds to the bottom zero-pad row)
            pl.BlockSpec((1, 2, wo, c2),
                         lambda i, j: (i, jnp.minimum((j + 1) * th, ho - 1), 0, 0)),
            pl.BlockSpec((3, c2, cout), lambda i, j: (0, 0, 0)),
            pl.BlockSpec((3, cin, cout), lambda i, j: (0, 0, 0)),
            pl.BlockSpec((1, cout), lambda i, j: (0, 0)),
        ],
        out_specs=pl.BlockSpec((1, th, wo, cout), lambda i, j: (i, j, 0, 0)),
        compiler_params=pltpu.CompilerParams(
            dimension_semantics=("parallel", "parallel"),
            vmem_limit_bytes=vmem_limit,
        ),
    )(xq, xq, w01, w2, b)


def _conv_downsample_xla(x, weight, bias):
    # Fallback for small C / odd spatial dims.
    xp = jnp.pad(x, ((0, 0), (0, 1), (0, 1), (0, 0)))
    y = lax.conv_general_dilated(
        xp, weight, window_strides=(2, 2), padding="VALID",
        dimension_numbers=("NHWC", "OIHW", "NHWC"))
    return y + bias.reshape(1, 1, 1, -1)


# ----------------------------------------------------------------------------
# avg_pool2d(kernel=2, stride=2) — 3 VPU adds on a row/column-paired block.
# ----------------------------------------------------------------------------
def _avgpool_kernel(x_ref, o_ref):
    # x_ref: (1, 2*th, Wo, 2*C) row/column-paired block; o_ref: (1, th, Wo, C)
    th, wo, c = o_ref.shape[1], o_ref.shape[2], o_ref.shape[3]
    blk = x_ref[0].reshape(th, 2, wo, 2 * c)
    top, bot = blk[:, 0], blk[:, 1]
    s = (top[:, :, 0:c] + top[:, :, c:]) + (bot[:, :, 0:c] + bot[:, :, c:])
    o_ref[0] = (s.astype(jnp.float32) * 0.25).astype(o_ref.dtype)


def _avgpool_downsample_pallas(x, *, max_row_tile=256):
    n, h, w, c = x.shape
    ho, wo = h // 2, w // 2
    xq = x[:, :2 * ho, :2 * wo, :].reshape(n, 2 * ho, wo, 2 * c)  # free if H,W even
    in_sz = x.dtype.itemsize

    def est(th):
        blk_in = _padded_bytes((2 * th, wo, 2 * c), in_sz)
        blk_out = _padded_bytes((th, wo, c), in_sz)
        temps = _padded_bytes((th, wo, c), in_sz) + 2 * _padded_bytes((th, wo, c), 4)
        return 2 * (blk_in + blk_out) + temps

    cap = _vmem_capacity_bytes()
    th = _pick_row_tile(ho, est, int(0.6 * cap), max_row_tile)
    th = _force_two_steps(th, ho, n)
    num_tiles = ho // th
    vmem_limit = int(min(0.75 * cap, max(est(th) + (4 << 20), 32 << 20)))

    return pl.pallas_call(
        _avgpool_kernel,
        out_shape=jax.ShapeDtypeStruct((n, ho, wo, c), x.dtype),
        grid=(n, num_tiles),
        in_specs=[pl.BlockSpec((1, 2 * th, wo, 2 * c), lambda i, j: (i, j, 0, 0))],
        out_specs=pl.BlockSpec((1, th, wo, c), lambda i, j: (i, j, 0, 0)),
        compiler_params=pltpu.CompilerParams(
            dimension_semantics=("parallel", "parallel"),
            vmem_limit_bytes=vmem_limit,
        ),
    )(xq)


def _avgpool_downsample_xla(x):
    n, h, w, c = x.shape
    ho, wo = h // 2, w // 2
    xc = x[:, :2 * ho, :2 * wo, :].reshape(n, ho, 2, wo, 2, c)
    return jnp.mean(xc, axis=(2, 4))


# ----------------------------------------------------------------------------
# Public API
# ----------------------------------------------------------------------------
def downsample_nhwc(x, weight=None, bias=None, *, with_conv=True,
                    compute_dtype=jnp.bfloat16, prefer_pallas=None,
                    conv_params=None, max_row_tile=256):
    """Downsample forward on NHWC activations (preferred in-model entry point).

    Pass `conv_params = prepare_conv_params(weight, bias, dtype)` to hoist the
    weight re-layout to model init; `weight`/`bias` are still required for the
    XLA fallback path (small C, odd H/W).
    """
    n, h, w, c = x.shape
    if with_conv:
        cout = conv_params[0].shape[-1] if conv_params is not None else weight.shape[0]
        use_pallas = prefer_pallas if prefer_pallas is not None else (
            c >= 128 and cout >= 128)
        # TODO(synk): odd H/W would need a ragged column pair in-kernel; those
        # shapes (rare in the VAE) take the XLA fallback instead.
        if use_pallas and h % 2 == 0 and w % 2 == 0:
            if conv_params is None:
                conv_params = prepare_conv_params(weight, bias, compute_dtype)
            return _conv_downsample_pallas(x, conv_params, max_row_tile=max_row_tile)
        return _conv_downsample_xla(x, weight, bias)
    use_pallas = prefer_pallas if prefer_pallas is not None else (c >= 128)
    if use_pallas and h >= 2 and w >= 2:
        return _avgpool_downsample_pallas(x, max_row_tile=max_row_tile)
    return _avgpool_downsample_xla(x)


def downsample(x_nchw, weight=None, bias=None, *, with_conv=True,
               compute_dtype=jnp.bfloat16, prefer_pallas=None,
               conv_params=None, max_row_tile=256):
    """NCHW wrapper matching the PyTorch module.  Prefer `downsample_nhwc`
    in-model: each NCHW<->NHWC transpose below is a full extra HBM pass."""
    x = jnp.transpose(x_nchw, (0, 2, 3, 1))
    y = downsample_nhwc(x, weight, bias, with_conv=with_conv,
                        compute_dtype=compute_dtype, prefer_pallas=prefer_pallas,
                        conv_params=conv_params, max_row_tile=max_row_tile)
    return jnp.transpose(y, (0, 3, 1, 2))


# ----------------------------------------------------------------------------
# Pure-JAX references (ground truth, NCHW like the PyTorch module)
# ----------------------------------------------------------------------------
def _ref_conv(x_nchw, weight, bias):
    xp = jnp.pad(x_nchw, ((0, 0), (0, 0), (0, 1), (0, 1)))
    y = lax.conv_general_dilated(
        xp, weight, window_strides=(2, 2), padding="VALID",
        dimension_numbers=("NCHW", "OIHW", "NCHW"))
    return y + bias.reshape(1, -1, 1, 1)


def _ref_avgpool(x_nchw):
    n, c, h, w = x_nchw.shape
    x = x_nchw[:, :, : (h // 2) * 2, : (w // 2) * 2]
    x = x.reshape(n, c, h // 2, 2, w // 2, 2)
    return jnp.mean(x, axis=(3, 5))


# ----------------------------------------------------------------------------
if __name__ == "__main__":
    key = jax.random.PRNGKey(0)
    k_x, k_w, k_b = jax.random.split(key, 3)

    N, C, H, W = 2, 4, 16, 16
    x = jax.random.normal(k_x, (N, C, H, W), dtype=jnp.float32)
    weight = jax.random.normal(k_w, (C, C, 3, 3), dtype=jnp.float32) * 0.1
    bias = jax.random.normal(k_b, (C,), dtype=jnp.float32) * 0.05

    ref_conv = _ref_conv(x, weight, bias)
    ref_pool = _ref_avgpool(x)

    # Conv path, f32 operands (exact check).  prefer_pallas=True overrides the
    # small-C XLA fallback so the Pallas kernel itself is exercised at C=4.
    y32 = jax.block_until_ready(
        downsample(x, weight, bias, with_conv=True,
                   compute_dtype=jnp.float32, prefer_pallas=True))
    assert y32.shape == (N, C, 8, 8), y32.shape
    assert jnp.allclose(y32, ref_conv, atol=1e-4, rtol=1e-4), "conv f32 mismatch"

    # Conv path, default bf16 MXU operands / f32 accumulation (looser tol).
    ybf = jax.block_until_ready(
        downsample(x, weight, bias, with_conv=True, prefer_pallas=True))
    assert ybf.shape == (N, C, 8, 8), ybf.shape
    assert jnp.allclose(ybf, ref_conv, atol=3e-2, rtol=3e-2), "conv bf16 mismatch"

    # Avg-pool path.
    yp = jax.block_until_ready(downsample(x, with_conv=False, prefer_pallas=True))
    assert yp.shape == (N, C, 8, 8), yp.shape
    assert jnp.allclose(yp, ref_pool, atol=1e-5, rtol=1e-5), "avgpool mismatch"

    print("KERNEL_OK")
</pallas_src>

<mosaic_0001>
module attributes {stable_mosaic.version = 11 : i64} {
  func.func @_conv_kernel(%arg0: i32, %arg1: i32, %arg2: memref<1x16x8x8xf32, #tpu.memory_space<vmem>>, %arg3: memref<1x2x8x8xf32, #tpu.memory_space<vmem>>, %arg4: memref<3x8x4xf32, #tpu.memory_space<vmem>>, %arg5: memref<3x4x4xf32, #tpu.memory_space<vmem>>, %arg6: memref<1x4xf32, #tpu.memory_space<vmem>>, %arg7: memref<1x8x8x4xf32, #tpu.memory_space<vmem>>) attributes {dimension_semantics = [#tpu.dimension_semantics<parallel>, #tpu.dimension_semantics<parallel>], iteration_bounds = array<i64: 2, 1>, scalar_prefetch = 0 : i64, scratch_operands = 0 : i64, tpu.core_type = #tpu.core_type<tc>, window_params = [{transform_indices = @transform_0, window_bounds = array<i64: 1, 16, 8, 8>}, {transform_indices = @transform_1, window_bounds = array<i64: 1, 2, 8, 8>}, {pipeline_mode = #tpu.pipeline_mode<synchronous>, transform_indices = @transform_2, window_bounds = array<i64: 3, 8, 4>}, {pipeline_mode = #tpu.pipeline_mode<synchronous>, transform_indices = @transform_3, window_bounds = array<i64: 3, 4, 4>}, {pipeline_mode = #tpu.pipeline_mode<synchronous>, transform_indices = @transform_4, window_bounds = array<i64: 1, 4>}, {transform_indices = @transform_5, window_bounds = array<i64: 1, 8, 8, 4>}]} {
    %c0 = arith.constant 0 : index
    %c0_0 = arith.constant 0 : index
    %c0_1 = arith.constant 0 : index
    %c0_2 = arith.constant 0 : index
    %0 = vector.load %arg2[%c0, %c0_0, %c0_1, %c0_2] : memref<1x16x8x8xf32, #tpu.memory_space<vmem>>, vector<1x16x8x8xf32>
    %1 = vector.shape_cast %0 : vector<1x16x8x8xf32> to vector<16x8x8xf32>
    %2 = vector.shape_cast %1 : vector<16x8x8xf32> to vector<8x2x8x8xf32>
    %3 = vector.extract_strided_slice %2 {offsets = [0, 0, 0, 0], sizes = [8, 1, 8, 8], strides = [1, 1, 1, 1]} : vector<8x2x8x8xf32> to vector<8x1x8x8xf32>
    %4 = vector.shape_cast %3 : vector<8x1x8x8xf32> to vector<8x8x8xf32>
    %5 = vector.extract_strided_slice %2 {offsets = [0, 1, 0, 0], sizes = [8, 1, 8, 8], strides = [1, 1, 1, 1]} : vector<8x2x8x8xf32> to vector<8x1x8x8xf32>
    %6 = vector.shape_cast %5 : vector<8x1x8x8xf32> to vector<8x8x8xf32>
    %c0_i32 = arith.constant 0 : i32
    %7 = arith.cmpi eq, %arg1, %c0_i32 : i32
    %cst = arith.constant 0.000000e+00 : f32
    %cst_3 = arith.constant 1.000000e+00 : f32
    %8 = arith.select %7, %cst, %cst_3 : f32
    %c0_4 = arith.constant 0 : index
    %c0_5 = arith.constant 0 : index
    %c0_6 = arith.constant 0 : index
    %c0_7 = arith.constant 0 : index
    %9 = vector.load %arg3[%c0_4, %c0_5, %c0_6, %c0_7] : memref<1x2x8x8xf32, #tpu.memory_space<vmem>>, vector<1x1x8x8xf32>
    %10 = vector.shape_cast %9 : vector<1x1x8x8xf32> to vector<1x8x8xf32>
    %11 = vector.broadcast %8 : f32 to vector<1x8x8xf32>
    %12 = arith.mulf %10, %11 : vector<1x8x8xf32>
    %13 = vector.extract_strided_slice %4 {offsets = [1, 0, 0], sizes = [7, 8, 8], strides = [1, 1, 1]} : vector<8x8x8xf32> to vector<7x8x8xf32>
    %14 = tpu.concatenate %13, %12 in 0 : vector<7x8x8xf32>, vector<1x8x8xf32> -> vector<8x8x8xf32>
    %15 = tpu.iota {dimensions = array<i32: 0>} : vector<64x1xi32>
    %c8_i32 = arith.constant 8 : i32
    %c0_i32_8 = arith.constant 0 : i32
    %16 = arith.cmpi eq, %c8_i32, %c0_i32_8 : i32
    %c1_i32 = arith.constant 1 : i32
    %17 = arith.select %16, %c1_i32, %c8_i32 : i32
    %18 = vector.broadcast %17 : i32 to vector<64x1xi32>
    %19 = arith.remsi %15, %18 : vector<64x1xi32>
    %c0_i32_9 = arith.constant 0 : i32
    %20 = vector.broadcast %c0_i32_9 : i32 to vector<64x1xi32>
    %21 = arith.cmpi ne, %19, %20 : vector<64x1xi32>
    %c0_i32_10 = arith.constant 0 : i32
    %22 = vector.broadcast %c0_i32_10 : i32 to vector<64x1xi32>
    %23 = arith.cmpi slt, %19, %22 : vector<64x1xi32>
    %c0_i32_11 = arith.constant 0 : i32
    %24 = arith.cmpi slt, %17, %c0_i32_11 : i32
    %25 = vector.broadcast %24 : i1 to vector<64x1xi1>
    %26 = vector.broadcast %25 : vector<64x1xi1> to vector<64x1xi1>
    %27 = arith.xori %23, %26 : vector<64x1xi1>
    %28 = arith.andi %27, %21 : vector<64x1xi1>
    %29 = vector.broadcast %17 : i32 to vector<64x1xi32>
    %30 = arith.addi %19, %29 : vector<64x1xi32>
    %31 = arith.select %28, %30, %19 : vector<64x1xi1>, vector<64x1xi32>
    %c7_i32 = arith.constant 7 : i32
    %32 = vector.broadcast %c7_i32 : i32 to vector<64x1xi32>
    %33 = arith.cmpi ne, %31, %32 : vector<64x1xi32>
    %34 = vector.shape_cast %4 : vector<8x8x8xf32> to vector<64x8xf32>
    %c0_12 = arith.constant 0 : index
    %c0_13 = arith.constant 0 : index
    %c0_14 = arith.constant 0 : index
    %35 = vector.load %arg4[%c0_12, %c0_13, %c0_14] : memref<3x8x4xf32, #tpu.memory_space<vmem>>, vector<1x8x4xf32>
    %36 = vector.shape_cast %35 : vector<1x8x4xf32> to vector<8x4xf32>
    %cst_15 = arith.constant dense<0.000000e+00> : vector<64x4xf32>
    %37 = tpu.matmul %34, %36, %cst_15 {dimension_numbers = #tpu.dot_dimension_numbers<[1], [0], [0], [1], [0, 0, 1, 1], [], []>} : vector<64x8xf32>, vector<8x4xf32>, vector<64x4xf32> -> vector<64x4xf32>
    %c63_i32 = arith.constant 63 : i32
    %38 = tpu.dynamic_rotate %34 by %c63_i32 dim 0 : vector<64x8xf32>, i32 -> vector<64x8xf32>
    %39 = vector.extract_strided_slice %38 {offsets = [0, 0], sizes = [64, 4], strides = [1, 1]} : vector<64x8xf32> to vector<64x4xf32>
    %cst_16 = arith.constant 0.000000e+00 : f32
    %40 = vector.broadcast %cst_16 : f32 to vector<64x4xf32>
    %41 = vector.shape_cast %33 : vector<64x1xi1> to vector<64x1xi1>
    %42 = vector.broadcast %41 : vector<64x1xi1> to vector<64x4xi1>
    %43 = arith.select %42, %39, %40 : vector<64x4xi1>, vector<64x4xf32>
    %c0_17 = arith.constant 0 : index
    %c0_18 = arith.constant 0 : index
    %c0_19 = arith.constant 0 : index
    %44 = vector.load %arg5[%c0_17, %c0_18, %c0_19] : memref<3x4x4xf32, #tpu.memory_space<vmem>>, vector<1x4x4xf32>
    %45 = vector.shape_cast %44 : vector<1x4x4xf32> to vector<4x4xf32>
    %cst_20 = arith.constant dense<0.000000e+00> : vector<64x4xf32>
    %46 = tpu.matmul %43, %45, %cst_20 {dimension_numbers = #tpu.dot_dimension_numbers<[1], [0], [0], [1], [0, 0, 1, 1], [], []>} : vector<64x4xf32>, vector<4x4xf32>, vector<64x4xf32> -> vector<64x4xf32>
    %47 = arith.addf %37, %46 : vector<64x4xf32>
    %48 = vector.shape_cast %6 : vector<8x8x8xf32> to vector<64x8xf32>
    %c1 = arith.constant 1 : index
    %c0_21 = arith.constant 0 : index
    %c0_22 = arith.constant 0 : index
    %49 = vector.load %arg4[%c1, %c0_21, %c0_22] : memref<3x8x4xf32, #tpu.memory_space<vmem>>, vector<1x8x4xf32>
    %50 = vector.shape_cast %49 : vector<1x8x4xf32> to vector<8x4xf32>
    %cst_23 = arith.constant dense<0.000000e+00> : vector<64x4xf32>
    %51 = tpu.matmul %48, %50, %cst_23 {dimension_numbers = #tpu.dot_dimension_numbers<[1], [0], [0], [1], [0, 0, 1, 1], [], []>} : vector<64x8xf32>, vector<8x4xf32>, vector<64x4xf32> -> vector<64x4xf32>
    %c63_i32_24 = arith.constant 63 : i32
    %52 = tpu.dynamic_rotate %48 by %c63_i32_24 dim 0 : vector<64x8xf32>, i32 -> vector<64x8xf32>
    %53 = vector.extract_strided_slice %52 {offsets = [0, 0], sizes = [64, 4], strides = [1, 1]} : vector<64x8xf32> to vector<64x4xf32>
    %cst_25 = arith.constant 0.000000e+00 : f32
    %54 = vector.broadcast %cst_25 : f32 to vector<64x4xf32>
    %55 = vector.shape_cast %33 : vector<64x1xi1> to vector<64x1xi1>
    %56 = vector.broadcast %55 : vector<64x1xi1> to vector<64x4xi1>
    %57 = arith.select %56, %53, %54 : vector<64x4xi1>, vector<64x4xf32>
    %c1_26 = arith.constant 1 : index
    %c0_27 = arith.constant 0 : index
    %c0_28 = arith.constant 0 : index
    %58 = vector.load %arg5[%c1_26, %c0_27, %c0_28] : memref<3x4x4xf32, #tpu.memory_space<vmem>>, vector<1x4x4xf32>
    %59 = vector.shape_cast %58 : vector<1x4x4xf32> to vector<4x4xf32>
    %cst_29 = arith.constant dense<0.000000e+00> : vector<64x4xf32>
    %60 = tpu.matmul %57, %59, %cst_29 {dimension_numbers = #tpu.dot_dimension_numbers<[1], [0], [0], [1], [0, 0, 1, 1], [], []>} : vector<64x4xf32>, vector<4x4xf32>, vector<64x4xf32> -> vector<64x4xf32>
    %61 = arith.addf %51, %60 : vector<64x4xf32>
    %62 = arith.addf %47, %61 : vector<64x4xf32>
    %63 = vector.shape_cast %14 : vector<8x8x8xf32> to vector<64x8xf32>
    %c2 = arith.constant 2 : index
    %c0_30 = arith.constant 0 : index
    %c0_31 = arith.constant 0 : index
    %64 = vector.load %arg4[%c2, %c0_30, %c0_31] : memref<3x8x4xf32, #tpu.memory_space<vmem>>, vector<1x8x4xf32>
    %65 = vector.shape_cast %64 : vector<1x8x4xf32> to vector<8x4xf32>
    %cst_32 = arith.constant dense<0.000000e+00> : vector<64x4xf32>
    %66 = tpu.matmul %63, %65, %cst_32 {dimension_numbers = #tpu.dot_dimension_numbers<[1], [0], [0], [1], [0, 0, 1, 1], [], []>} : vector<64x8xf32>, vector<8x4xf32>, vector<64x4xf32> -> vector<64x4xf32>
    %c63_i32_33 = arith.constant 63 : i32
    %67 = tpu.dynamic_rotate %63 by %c63_i32_33 dim 0 : vector<64x8xf32>, i32 -> vector<64x8xf32>
    %68 = vector.extract_strided_slice %67 {offsets = [0, 0], sizes = [64, 4], strides = [1, 1]} : vector<64x8xf32> to vector<64x4xf32>
    %cst_34 = arith.constant 0.000000e+00 : f32
    %69 = vector.broadcast %cst_34 : f32 to vector<64x4xf32>
    %70 = vector.shape_cast %33 : vector<64x1xi1> to vector<64x1xi1>
    %71 = vector.broadcast %70 : vector<64x1xi1> to vector<64x4xi1>
    %72 = arith.select %71, %68, %69 : vector<64x4xi1>, vector<64x4xf32>
    %c2_35 = arith.constant 2 : index
    %c0_36 = arith.constant 0 : index
    %c0_37 = arith.constant 0 : index
    %73 = vector.load %arg5[%c2_35, %c0_36, %c0_37] : memref<3x4x4xf32, #tpu.memory_space<vmem>>, vector<1x4x4xf32>
    %74 = vector.shape_cast %73 : vector<1x4x4xf32> to vector<4x4xf32>
    %cst_38 = arith.constant dense<0.000000e+00> : vector<64x4xf32>
    %75 = tpu.matmul %72, %74, %cst_38 {dimension_numbers = #tpu.dot_dimension_numbers<[1], [0], [0], [1], [0, 0, 1, 1], [], []>} : vector<64x4xf32>, vector<4x4xf32>, vector<64x4xf32> -> vector<64x4xf32>
    %76 = arith.addf %66, %75 : vector<64x4xf32>
    %77 = arith.addf %62, %76 : vector<64x4xf32>
    %c0_39 = arith.constant 0 : index
    %c0_40 = arith.constant 0 : index
    %78 = vector.load %arg6[%c0_39, %c0_40] : memref<1x4xf32, #tpu.memory_space<vmem>>, vector<1x4xf32>
    %79 = vector.broadcast %78 : vector<1x4xf32> to vector<64x4xf32>
    %80 = arith.addf %77, %79 : vector<64x4xf32>
    %81 = vector.shape_cast %80 : vector<64x4xf32> to vector<8x8x4xf32>
    %c0_41 = arith.constant 0 : index
    %c0_42 = arith.constant 0 : index
    %c0_43 = arith.constant 0 : index
    %c0_44 = arith.constant 0 : index
    %82 = vector.load %arg7[%c0_41, %c0_42, %c0_43, %c0_44] : memref<1x8x8x4xf32, #tpu.memory_space<vmem>>, vector<1x8x8x4xf32>
    %83 = vector.shape_cast %82 : vector<1x8x8x4xf32> to vector<8x8x4xf32>
    %84 = vector.shape_cast %81 : vector<8x8x4xf32> to vector<1x8x8x4xf32>
    tpu.vector_store %arg7[%c0_41, %c0_42, %c0_43, %c0_44], %84 {strides = array<i32>} : memref<1x8x8x4xf32, #tpu.memory_space<vmem>>, vector<1x8x8x4xf32>,
    return
  }
  func.func @transform_0(%arg0: i32, %arg1: i32) -> (i32, i32, i32, i32) {
    %c0_i32 = arith.constant 0 : i32
    %c0_i32_0 = arith.constant 0 : i32
    %c0_i32_1 = arith.constant 0 : i32
    return %arg0, %arg1, %c0_i32, %c0_i32_0 : i32, i32, i32, i32
  }
  func.func @transform_1(%arg0: i32, %arg1: i32) -> (i32, i32, i32, i32) {
    %c1_i32 = arith.constant 1 : i32
    %0 = arith.addi %arg1, %c1_i32 : i32
    %c8_i32 = arith.constant 8 : i32
    %1 = arith.muli %0, %c8_i32 : i32
    %c7_i32 = arith.constant 7 : i32
    %2 = arith.minsi %1, %c7_i32 : i32
    %c0_i32 = arith.constant 0 : i32
    %c0_i32_0 = arith.constant 0 : i32
    %c0_i32_1 = arith.constant 0 : i32
    return %arg0, %2, %c0_i32, %c0_i32_0 : i32, i32, i32, i32
  }
  func.func @transform_2(%arg0: i32, %arg1: i32) -> (i32, i32, i32) {
    %c0_i32 = arith.constant 0 : i32
    %c0_i32_0 = arith.constant 0 : i32
    %c0_i32_1 = arith.constant 0 : i32
    %c0_i32_2 = arith.constant 0 : i32
    return %c0_i32, %c0_i32_0, %c0_i32_1 : i32, i32, i32
  }
  func.func @transform_3(%arg0: i32, %arg1: i32) -> (i32, i32, i32) {
    %c0_i32 = arith.constant 0 : i32
    %c0_i32_0 = arith.constant 0 : i32
    %c0_i32_1 = arith.constant 0 : i32
    %c0_i32_2 = arith.constant 0 : i32
    return %c0_i32, %c0_i32_0, %c0_i32_1 : i32, i32, i32
  }
  func.func @transform_4(%arg0: i32, %arg1: i32) -> (i32, i32) {
    %c0_i32 = arith.constant 0 : i32
    %c0_i32_0 = arith.constant 0 : i32
    %c0_i32_1 = arith.constant 0 : i32
    return %c0_i32, %c0_i32_0 : i32, i32
  }
  func.func @transform_5(%arg0: i32, %arg1: i32) -> (i32, i32, i32, i32) {
    %c0_i32 = arith.constant 0 : i32
    %c0_i32_0 = arith.constant 0 : i32
    %c0_i32_1 = arith.constant 0 : i32
    return %arg0, %arg1, %c0_i32, %c0_i32_0 : i32, i32, i32, i32
  }
}

</mosaic_0001>

<bundles_post_ra>
// kernel: tpu_custom_call.1
= control target key start
LH: loop header
LB: loop body
LE: loop exit
PB: predicated region body
PF: predicated region fallthrough
CT: control target
= control target key end

     0   :  { %s1787_s18 = smov 0   ;;  %s1789_s19 = smov 0   ;;  %s2164_s0 = inlined_call_operand.vmem [shape: f32[2,16,8,8], index: 0, kind: input, shape index: {}]   ;;  %s2165_s1 = inlined_call_operand.vmem [shape: f32[2,16,8,8], index: 1, kind: input, shape index: {}]   ;;  %s2166_s2 = inlined_call_operand.vmem [shape: f32[3,8,4], index: 2, kind: input, shape index: {}]   ;;  %s2167_s3 = inlined_call_operand.vmem [shape: f32[3,4,4], index: 3, kind: input, shape index: {}]   ;;  %s2168_s4 = inlined_call_operand.vmem [shape: f32[1,4], index: 4, kind: input, shape index: {}]   ;;  %s2169_s5 = inlined_call_operand.vmem [shape: f32[2,8,8,4], index: 5, kind: output, shape index: {}]  }
   0x1   :  { %s1791_s20 = smov 0  }
   0x2 LB: > { %s27_s21 = sadd.s32 1, %s1751_s19  ;;  %p1461_p0 = scmp.ge.s32.totalorder %s1755_s20, 1  ;;  %s1755_s20 = sphi %s1791_s20, %s15_s20   ;;  %s1751_s19 = sphi %s1789_s19, %s2187_s19   ;;  %s1747_s18 = sphi %s1787_s18, %s2186_s18  }
   0x3   : > { %p29_p1 = scmp.ge.s32.totalorder %s27_s21, 2  ;;  %p241_p2 = scmp.lt.s32.totalorder %s1755_s20, 3 }
   0x5   : > { %s2189_s21 = smov (%p29_p1, %s27_s21), 0  ;;  %p242_p3 = pnand %p1461_p0, %p241_p2 }
   0x6   : > { %v1485_v0 = vld [vmem:[%s2166_s2 + $0x8] sm:$0xff] (!%p242_p3)  ;;  %p291_p4 = scmp.lt.s32.totalorder (!%p242_p3), %s1747_s18, 1  ;;  %v504_v1 = vld [vmem:[%s2167_s3] sm:$0xf] (!%p242_p3)  ;;  %vm530_vm0 = vcmask (!%p242_p3), 1043456   ;;  %v349_v2 = vlaneseq (!%p242_p3)  ;;  %vm639_vm1 = vcmask (!%p242_p3), 64512  }
   0x7   : > { %245 = sbr.rel (%p242_p3) target bundleno = 286 (0x11e), region = 40  ;;  %1627 = vmatprep.subr.mxu0 (!%p242_p3), %v1485_v0  ;;  %1585 = vmatprep.subr.msk.mxu1 (!%p242_p3), %vm530_vm0, %v504_v1  ;;  %v1815_v3 = vld [vmem:[%s2166_s2] sm:$0xff] (!%p242_p3)  ;;  %v1505_v4 = vld [vmem:[%s2167_s3 + $0x8] sm:$0xf] (!%p242_p3)  ;;  %v1842_v10 = vld [vmem:[%s2166_s2 + $0x10] sm:$0xff] (!%p242_p3)  ;;  %vm505_vm3 = vcmask (!%p242_p3), 31744  }
   0x8   : > { %1628 = vmatpush3.msra.mxu0 (!%p242_p3), %v1485_v0  ;;  %1586 = vmatpush3.msk.msra.mxu1 (!%p242_p3), %vm530_vm0, %v504_v1  ;;  %v1823_v5 = vshrl.u32 (!%p242_p3), %v349_v2, 7  ;;  %v1486_v44 = vld [vmem:[%s2167_s3 + $0x4] sm:$0xf] (!%p242_p3) }
   0x9   : > { %1599 = vmatprep.subr.mxu1 (!%p242_p3), %v1815_v3  ;;  %1641 = vmatprep.subr.msk.mxu0 (!%p242_p3), %vm530_vm0, %v1505_v4 }
   0xa   : > { %v362_v6 = vand.u32 (!%p242_p3), 7, %v1823_v5  ;;  %v351_v7 = vadd.s32 (!%p242_p3), 8, %v1823_v5  ;;  %v352_v8 = vadd.s32 (!%p242_p3), 16, %v1823_v5  ;;  %v353_v9 = vadd.s32 (!%p242_p3), 24, %v1823_v5 }
   0xb   : > { %vm471_vm2 = vcmp.lt.s32.totalorder (!%p242_p3), %v1823_v5, 7  ;;  %v354_v30 = vadd.s32 (!%p242_p3), 32, %v1823_v5  ;;  %v355_v35 = vadd.s32 (!%p242_p3), 40, %v1823_v5  ;;  %v356_v40 = vadd.s32 (!%p242_p3), 48, %v1823_v5 }
   0xc   : > { %v369_v14 = vand.u32 (!%p242_p3), 7, %v351_v7  ;;  %v376_v15 = vand.u32 (!%p242_p3), 7, %v352_v8  ;;  %vm1868_vm4 = vcmp.ne.s32.totalorder (!%p242_p3), %v362_v6, 7  ;;  %v383_v29 = vand.u32 (!%p242_p3), 7, %v353_v9 }
   0xd   : > { %v390_v46 = vand.u32 (!%p242_p3), 7, %v354_v30  ;;  %v397_v51 = vand.u32 (!%p242_p3), 7, %v355_v35  ;;  %v404_v56 = vand.u32 (!%p242_p3), 7, %v356_v40  ;;  %v357_v63 = vadd.s32 (!%p242_p3), 56, %v1823_v5  ;;  %v1523_v5 = vld [vmem:[%s2168_s4] ss:$0 sm:$0xff] (!%p242_p3) }
   0xe   : > { %s2191_s18 = smov (!%p291_p4, %s1747_s18), 1  ;;  %vm1875_vm5 = vcmp.ne.s32.totalorder %v369_v14, 7  ;;  %vm1889_vm6 = vcmp.ne.s32.totalorder %v376_v15, 7  ;;  %vm1933_vm7 = vcmp.ne.s32.totalorder %v383_v29, 7 }
   0xf   : > { %s1526_s30 = sshll.u32 %s2191_s18, 7  ;;  %vm1965_vm8 = vcmp.ne.s32.totalorder %v390_v46, 7  ;;  %vm1976_vm9 = vcmp.ne.s32.totalorder %v397_v51, 7  ;;  %vm1989_vm10 = vcmp.ne.s32.totalorder %v404_v56, 7  ;;  %v411_v6 = vand.u32 7, %v357_v63  ;;  %s1529_s17 = sshll.u32 %s2191_s18, 6 }
  0x10   : > { %s1836_s8 = scalar_lea.vmem %s2164_s0, %s1526_s30  ;;  %s1926_s11 = sadd.s32 112, %s1526_s30 }
  0x11   : > { %v1845_v11 = vld [vmem:[%s1836_s8 + $0x8] sm:$0xff]  ;;  %v1848_v12 = vld [vmem:[%s1836_s8 + $0x18] sm:$0xff]  ;;  %v1851_v13 = vld [vmem:[%s1836_s8] sm:$0xff]  ;;  %s312_s16 = scalar_lea.vmem %s2165_s1, %s1926_s11  ;;  %vm2015_vm11 = vcmp.ne.s32.totalorder %v411_v6, 7  ;;  %s2137_s26 = scalar_lea.vmem %s2169_s5, %s1529_s17 }
  0x12   : > { %1629 = vmatprep.mubr.msk.f32.mxu0 %vm639_vm1, %v1845_v11  ;;  %v1856_v16 = vld [vmem:[%s1836_s8 + $0x10] sm:$0xff]  ;;  %v463_v17 = vrot.slane %v1851_v13, 1  ;;  %v1861_v18 = vld [vmem:[%s1836_s8 + $0x28] sm:$0xff]  ;;  %v1864_v19 = vld [vmem:[%s1836_s8 + $0x20] sm:$0xff]  ;;  %v772_v35 = vrot.slane %v1848_v12, 1 }
  0x13   : > { %1630 = vmatmul.mubr.msk.f32.vlgmr.msra.gmra.mrb[0].mxu0 %vm639_vm1, %v1848_v12  ;;  %v1873_v21 = vrot.slane %v1856_v16, 1  ;;  %v465_v23 = vrot.slane %v1864_v19, 1  ;;  %v1881_v24 = vld [vmem:[%s1836_s8 + $0x30] sm:$0xff]  ;;  %v1886_v25 = vld [vmem:[%s1836_s8 + $0x38] sm:$0xff]  ;;  %v1895_v28 = vld [vmem:[%s1836_s8 + $0x40] sm:$0xff] }
  0x14   : > { %1632 = vmatprep.mubr.msk.f32.mxu0 %vm639_vm1, %v1861_v18  ;;  %1642 = vmatpush3.msk.msra.mxu0 %vm530_vm0, %v1505_v4  ;;  %v466_v27 = vrot.slane %v1881_v24, 1  ;;  %v1907_v33 = vld [vmem:[%s1836_s8 + $0x48] sm:$0xff]  ;;  %v1910_v34 = vld [vmem:[%s1836_s8 + $0x50] sm:$0xff]  ;;  %v1921_v39 = vld [vmem:[%s1836_s8 + $0x60] sm:$0xff]  ;;  %v467_v43 = vrot.slane %v1895_v28, 1 }
  0x15   : > { %v478_v31 = vsel %vm471_vm2, %v463_v17, %v1873_v21  ;;  %v477_v32 = vsel %vm471_vm2, %v1873_v21, %v465_v23  ;;  %1655 = vmatprep.subr.mxu0 %v1842_v10  ;;  %v1945_v45 = vld [vmem:[%s1836_s8 + $0x58] sm:$0xff]  ;;  %v468_v47 = vrot.slane %v1910_v34, 1  ;;  %v1949_v48 = vld [vmem:[%s1836_s8 + $0x70] sm:$0xff]  ;;  %v1956_v50 = vld [vmem:[%s1836_s8 + $0x68] sm:$0xff]  ;;  %v469_v52 = vrot.slane %v1921_v39, 1 }
  0x16   : > { %v496_v36 = vsel %vm1868_vm4, %v478_v31, 0.0  ;;  %v497_v37 = vsel %vm1875_vm5, %v477_v32, 0.0  ;;  %v476_v38 = vsel %vm471_vm2, %v465_v23, %v466_v27  ;;  %v475_v49 = vsel %vm471_vm2, %v466_v27, %v467_v43  ;;  %v1987_v61 = vld [vmem:[%s1836_s8 + $0x78] sm:$0xff]  ;;  %v346_v0 = vld [vmem:[%s312_s16] sm:$0xff] }
  0x17   : > { %1587 = vmatprep.mubr.msk.f32.mxu1 %vm505_vm3, %v496_v36  ;;  %1633 = vmatmul.mubr.msk.f32.gmra.mrb[2].mxu0 %vm639_vm1, %v1886_v25  ;;  %v498_v41 = vsel %vm1889_vm6, %v476_v38, 0.0  ;;  %v499_v53 = vsel %vm1933_vm7, %v475_v49, 0.0  ;;  %v474_v55 = vsel %vm471_vm2, %v467_v43, %v468_v47  ;;  %v473_v59 = vsel %vm471_vm2, %v468_v47, %v469_v52 }
  0x18   : > { %1588 = vmatmul.mubr.msk.f32.vlgmr.msra.gmra.mrb[0].mxu1 %vm505_vm3, %v497_v37  ;;  %1635 = vmatprep.mubr.msk.f32.mxu0 %vm639_vm1, %v1907_v33  ;;  %v500_v57 = vsel %vm1965_vm8, %v474_v55, 0.0  ;;  %v470_v60 = vrot.slane %v1949_v48, 1  ;;  %v501_v1 = vsel %vm1976_vm9, %v473_v59, 0.0  ;;  %v2009_v8 = vmul.f32 0.0, %v346_v0 }
  0x19   : > { %1600 = vmatpush3.msra.mxu1 %v1815_v3  ;;  %1590 = vmatprep.mubr.msk.f32.mxu1 %vm505_vm3, %v498_v41  ;;  %v1071_v3 = vsel %vm1868_vm4, %v477_v32, 0.0  ;;  %v1072_v9 = vsel %vm1875_vm5, %v476_v38, 0.0  ;;  %v1074_v27 = vsel %vm1933_vm7, %v474_v55, 0.0  ;;  %v1075_v29 = vsel %vm1965_vm8, %v473_v59, 0.0 }
  0x1a   : > { %1613 = vmatprep.subr.msk.mxu1 %vm530_vm0, %v1486_v44  ;;  %v472_v2 = vsel %vm471_vm2, %v469_v52, %v470_v60  ;;  %v479_v7 = vsel %vm471_vm2, %v470_v60, %v463_v17  ;;  %v1073_v17 = vsel %vm1889_vm6, %v475_v49, 0.0  ;;  %v1068_v23 = vrot.slane %v2009_v8, 1 }
  0x1b   : > { %1636 = vmatmul.mubr.msk.f32.gmra.mrb[4].mxu0 %vm639_vm1, %v1945_v45  ;;  %v502_v4 = vsel %vm1989_vm10, %v472_v2, 0.0  ;;  %v503_v15 = vsel %vm2015_vm11, %v479_v7, 0.0  ;;  %v1076_v31 = vsel %vm1976_vm9, %v472_v2, 0.0  ;;  %v771_v32 = vrot.slane %v1845_v11, 1 }
  0x1c   : > { %1591 = vmatmul.mubr.msk.f32.gmra.mrb[2].mxu1 %vm505_vm3, %v499_v53  ;;  %1638 = vmatprep.mubr.msk.f32.mxu0 %vm639_vm1, %v1956_v50  ;;  %v1069_v30 = vsel %vm471_vm2, %v470_v60, %v1068_v23  ;;  %v773_v37 = vrot.slane %v1861_v18, 1  ;;  %v775_v18 = vrot.slane %v1907_v33, 1  ;;  %v776_v38 = vrot.slane %v1945_v45, 1 }
  0x1d   : > { %1593 = vmatprep.mubr.msk.f32.mxu1 %vm505_vm3, %v500_v57  ;;  %v785_v11 = vsel %vm471_vm2, %v771_v32, %v772_v35  ;;  %v777_v20 = vrot.slane %v1956_v50, 1  ;;  %v778_v41 = vrot.slane %v1987_v61, 1 }
  0x1e   : > { %v784_v12 = vsel %vm471_vm2, %v772_v35, %v773_v37 }
  0x1f   : > { %1639 = vmatmul.mubr.msk.f32.gmra.mrb[6].mxu0 %vm639_vm1, %v1987_v61  ;;  %v780_v43 = vsel %vm471_vm2, %v776_v38, %v777_v20 }
  0x20   : > { %1594 = vmatmul.mubr.msk.f32.gmra.mrb[4].mxu1 %vm505_vm3, %v501_v1  ;;  %1643 = vmatprep.mubr.msk.f32.mxu0 %vm505_vm3, %v1071_v3 }
  0x21   : > { %1596 = vmatprep.mubr.msk.f32.mxu1 %vm505_vm3, %v502_v4 }
  0x23   : > { %1644 = vmatmul.mubr.msk.f32.vlgmr.msra.gmra.mrb[0].mxu0 %vm505_vm3, %v1072_v9 }
  0x24   : > { %1597 = vmatmul.mubr.msk.f32.gmra.mrb[6].mxu1 %vm505_vm3, %v503_v15  ;;  %1646 = vmatprep.mubr.msk.f32.mxu0 %vm505_vm3, %v1073_v17 }
  0x25   : > { %1601 = vmatprep.mubr.msk.f32.mxu1 %vm639_vm1, %v1851_v13  ;;  %1656 = vmatpush3.msra.mxu0 %v1842_v10  ;;  %v1077_v10 = vsel %vm1989_vm10, %v1069_v30, 0.0  ;;  %v1070_v13 = vsel %vm471_vm2, %v1068_v23, %v1873_v21  ;;  %v774_v21 = vrot.slane %v1886_v25, 1  ;;  %v787_v25 = vsel %vm1868_vm4, %v785_v11, 0.0 }
  0x26   : > { %v1078_v36 = vsel %vm2015_vm11, %v1070_v13, 0.0 }
  0x27   : > { %1647 = vmatmul.mubr.msk.f32.gmra.mrb[2].mxu0 %vm505_vm3, %v1074_v27  ;;  %v783_v40 = vsel %vm471_vm2, %v773_v37, %v774_v21 }
  0x28   : > { %1602 = vmatmul.mubr.msk.f32.vlgmr.msra.gmra.mrb[0].mxu1 %vm639_vm1, %v1856_v16  ;;  %1649 = vmatprep.mubr.msk.f32.mxu0 %vm505_vm3, %v1075_v29  ;;  %v789_v33 = vsel %vm1889_vm6, %v783_v40, 0.0 }
  0x29   : > { %1614 = vmatpush3.msk.msra.mxu1 %vm530_vm0, %v1486_v44  ;;  %1604 = vmatprep.mubr.msk.f32.mxu1 %vm639_vm1, %v1864_v19  ;;  %v786_v44 = vsel %vm471_vm2, %v778_v41, %v771_v32 }
  0x2b   : > { %1650 = vmatmul.mubr.msk.f32.gmra.mrb[4].mxu0 %vm505_vm3, %v1076_v31 }
  0x2c   : > { %1605 = vmatmul.mubr.msk.f32.gmra.mrb[2].mxu1 %vm639_vm1, %v1881_v24  ;;  %1652 = vmatprep.mubr.msk.f32.mxu0 %vm505_vm3, %v1077_v10 }
  0x2d   : > { %1607 = vmatprep.mubr.msk.f32.mxu1 %vm639_vm1, %v1895_v28 }
  0x2f   : > { %1653 = vmatmul.mubr.msk.f32.gmra.mrb[6].mxu0 %vm505_vm3, %v1078_v36 }
  0x30   : > { %1608 = vmatmul.mubr.msk.f32.gmra.mrb[4].mxu1 %vm639_vm1, %v1910_v34  ;;  %1657 = vmatprep.mubr.msk.f32.mxu0 %vm639_vm1, %v1856_v16  ;;  %v788_v16 = vsel %vm1875_vm5, %v784_v12, 0.0 }
  0x31   : > { %1610 = vmatprep.mubr.msk.f32.mxu1 %vm639_vm1, %v1921_v39 }
  0x33   : > { %1658 = vmatmul.mubr.msk.f32.vlgmr.msra.gmra.mrb[0].mxu0 %vm639_vm1, %v1864_v19  ;;  %v782_v19 = vsel %vm471_vm2, %v774_v21, %v775_v18 }
  0x34   : > { %1611 = vmatmul.mubr.msk.f32.gmra.mrb[6].mxu1 %vm639_vm1, %v1949_v48  ;;  %1660 = vmatprep.mubr.msk.f32.mxu0 %vm639_vm1, %v1881_v24  ;;  %v781_v24 = vsel %vm471_vm2, %v775_v18, %v776_v38  ;;  %v790_v22 = vsel %vm1933_vm7, %v782_v19, 0.0 }
  0x35   : > { %1615 = vmatprep.mubr.msk.f32.mxu1 %vm505_vm3, %v787_v25  ;;  %v791_v26 = vsel %vm1965_vm8, %v781_v24, 0.0 }
  0x37   : > { %1661 = vmatmul.mubr.msk.f32.gmra.mrb[2].mxu0 %vm639_vm1, %v1895_v28  ;;  %v779_v28 = vsel %vm471_vm2, %v777_v20, %v778_v41 }
  0x38   : > { %1616 = vmatmul.mubr.msk.f32.vlgmr.msra.gmra.mrb[0].mxu1 %vm505_vm3, %v788_v16  ;;  %1663 = vmatprep.mubr.msk.f32.mxu0 %vm639_vm1, %v1910_v34  ;;  %v792_v34 = vsel %vm1976_vm9, %v780_v43, 0.0  ;;  %v793_v42 = vsel %vm1989_vm10, %v779_v28, 0.0 }
  0x39   : > { %1618 = vmatprep.mubr.msk.f32.mxu1 %vm505_vm3, %v789_v33 }
  0x3b   : > { %1664 = vmatmul.mubr.msk.f32.gmra.mrb[4].mxu0 %vm639_vm1, %v1921_v39  ;;  %v794_v39 = vsel %vm2015_vm11, %v786_v44, 0.0 }
  0x3c   : > { %1619 = vmatmul.mubr.msk.f32.gmra.mrb[2].mxu1 %vm505_vm3, %v790_v22  ;;  %1666 = vmatprep.mubr.msk.f32.mxu0 %vm639_vm1, %v1949_v48 }
  0x3d   : > { %1621 = vmatprep.mubr.msk.f32.mxu1 %vm505_vm3, %v791_v26 }
  0x3f   : > { %1667 = vmatmul.mubr.msk.f32.gmra.mrb[6].mxu0 %vm639_vm1, %v2009_v8 }
  0x40   : > { %1622 = vmatmul.mubr.msk.f32.gmra.mrb[4].mxu1 %vm505_vm3, %v792_v34 }
  0x41   : > { %1624 = vmatprep.mubr.msk.f32.mxu1 %vm505_vm3, %v793_v42 }
  0x44   : > { %1625 = vmatmul.mubr.msk.f32.gmra.mrb[6].mxu1 %vm505_vm3, %v794_v39 }
 0x106   : > { %v1659_v45 = vpop.f32.mrb[0].mxu0 }
 0x107   : > { %v1282_v46 = vpop.f32.mrb[1].mxu0 }
 0x10a   : > { %v1662_v47 = vpop.f32.mrb[2].mxu0 }
 0x10b   : > { %v1617_v48 = vpop.f32.mrb[0].mxu1  ;;  %v1292_v49 = vpop.f32.mrb[3].mxu0 }
 0x10c   : > { %v1669_v50 = vadd.f32 %v1659_v45, %v1617_v48  ;;  %v890_v51 = vpop.f32.mrb[1].mxu1 }
 0x10d   : > { %v1670_v52 = vadd.f32 %v1282_v46, %v890_v51 }
 0x10e   : > { %v1337_v53 = vadd.f32 %v1669_v50, %v1523_v5  ;;  %v1665_v54 = vpop.f32.mrb[4].mxu0 }
 0x10f   : > { %v1336_v55 = vadd.f32 %v1670_v52, %v1523_v5  ;;  %v1620_v56 = vpop.f32.mrb[2].mxu1  ;;  %v1302_v57 = vpop.f32.mrb[5].mxu0 }
 0x110   : > { %1345 = vst.msk [vmem:[%s2137_s26 + $0x8] sm:$0xff] %vm505_vm3, %v1337_v53  ;;  %v1671_v58 = vadd.f32 %v1662_v47, %v1620_v56  ;;  %v900_v59 = vpop.f32.mrb[3].mxu1 }
 0x111   : > { %1344 = vst.msk [vmem:[%s2137_s26] sm:$0xff] %vm505_vm3, %v1336_v55  ;;  %v1672_v60 = vadd.f32 %v1292_v49, %v900_v59 }
 0x112   : > { %v1339_v61 = vadd.f32 %v1671_v58, %v1523_v5  ;;  %v1668_v62 = vpop.f32.mrb[6].mxu0 }
 0x113   : > { %v1338_v63 = vadd.f32 %v1672_v60, %v1523_v5  ;;  %v1623_v0 = vpop.f32.mrb[4].mxu1  ;;  %v1312_v1 = vpop.f32.mrb[7].mxu0 }
 0x114   : > { %1347 = vst.msk [vmem:[%s2137_s26 + $0x18] sm:$0xff] %vm505_vm3, %v1339_v61  ;;  %v1673_v2 = vadd.f32 %v1665_v54, %v1623_v0  ;;  %v910_v3 = vpop.f32.mrb[5].mxu1 }
 0x115   : > { %1346 = vst.msk [vmem:[%s2137_s26 + $0x10] sm:$0xff] %vm505_vm3, %v1338_v63  ;;  %v1674_v4 = vadd.f32 %v1302_v57, %v910_v3 }
 0x116   : > { %v1341_v6 = vadd.f32 %v1673_v2, %v1523_v5 }
 0x117   : > { %v1340_v7 = vadd.f32 %v1674_v4, %v1523_v5  ;;  %v1626_v8 = vpop.f32.mrb[6].mxu1 }
 0x118   : > { %1349 = vst.msk [vmem:[%s2137_s26 + $0x28] sm:$0xff] %vm505_vm3, %v1341_v6  ;;  %v1675_v9 = vadd.f32 %v1668_v62, %v1626_v8  ;;  %v920_v14 = vpop.f32.mrb[7].mxu1 }
 0x119   : > { %1348 = vst.msk [vmem:[%s2137_s26 + $0x20] sm:$0xff] %vm505_vm3, %v1340_v7  ;;  %v1676_v15 = vadd.f32 %v1312_v1, %v920_v14 }
 0x11a   : > { %v1343_v17 = vadd.f32 %v1675_v9, %v1523_v5 }
 0x11b   : > { %v1342_v23 = vadd.f32 %v1676_v15, %v1523_v5 }
 0x11c   : > { %1351 = vst.msk [vmem:[%s2137_s26 + $0x38] sm:$0xff] %vm505_vm3, %v1343_v17 }
 0x11d   : > { %1350 = vst.msk [vmem:[%s2137_s26 + $0x30] sm:$0xff] %vm505_vm3, %v1342_v23 }
 0x11e PF: > { %s15_s20 = sadd.s32 1, %s1755_s20   ;;  %s2186_s18 = smov %s1751_s19 }
 0x11f   : > { %p12_p5 = scmp.ge.s32.totalorder %s15_s20, 4   ;;  %s2187_s19 = smov %s2189_s21 }
 0x121   :  { %14 = sbr.rel (!%p12_p5) target bundleno = 2 (0x2), region = 77 }

</bundles_post_ra>
